<compile_context>
chip_gen: v7x
topology: tpu7x:2x2x1
jax: 0.10.0
libtpu: 0.0.40
codegen_flags: <defaults>
</compile_context>

<pallas_src>
import jax
import jax.numpy as jnp
from jax.experimental import pallas as pl
from jax.experimental.pallas import tpu as pltpu

# Small shapes consistent with the module (real model: H=768, C_CONV=1024,
# classifier input 3072, S = tokenizer max length).
B = 2            # batch
S_LEN = 16       # sequence length
HID = 128        # backbone hidden size (lane-dense toy stand-in for 768)
C_CONV = 128     # conv output channels (toy stand-in for 1024)
NUM_LABELS = 2   # start / end
PAD = 2          # 'same' padding for the widest (kernel_size=5) branch
VOCAB = 50


# ----------------------------- Pallas kernel ------------------------------- #
def conv_head_kernel(xp_ref, w1_ref, b1_ref, w3_ref, b3_ref, w5_ref, b5_ref,
                     wc1_ref, wc3_ref, wc5_ref, bc_ref, o_ref):
    """Fused conv1/conv3/conv5 (hidden-as-channels) + ReLU + Linear(3C -> 2).

    xp_ref : (S+4, H) bf16   sequence pre-padded by 2 on both sides
    w1_ref : (H, C)   bf16   conv1d k=1 weight (transposed)
    w3_ref : (3, H, C) bf16  conv1d k=3 taps
    w5_ref : (5, H, C) bf16  conv1d k=5 taps
    b*_ref : (1, C)   f32    conv biases
    wc*_ref: (C, 2)   bf16   per-branch slice of the classifier weight
    bc_ref : (2, 1)   f32    classifier bias
    o_ref  : (2, S)   f32    logits, transposed so S sits on the lane axis
    """
    xp = xp_ref[...]                                    # (S+4, H) bf16

    def tap(off):                                       # static VMEM slice
        return xp[off:off + S_LEN, :]                   # (S, H)

    # kernel_size=1 branch: center tap only.
    acc1 = jnp.dot(tap(PAD), w1_ref[...], preferred_element_type=jnp.float32)

    # kernel_size=3 branch: taps at padded offsets 1, 2, 3.
    acc3 = jnp.dot(tap(1), w3_ref[0], preferred_element_type=jnp.float32)
    acc3 += jnp.dot(tap(2), w3_ref[1], preferred_element_type=jnp.float32)
    acc3 += jnp.dot(tap(3), w3_ref[2], preferred_element_type=jnp.float32)

    # kernel_size=5 branch: taps at padded offsets 0..4.
    acc5 = jnp.dot(tap(0), w5_ref[0], preferred_element_type=jnp.float32)
    for k in range(1, 5):
        acc5 += jnp.dot(tap(k), w5_ref[k], preferred_element_type=jnp.float32)

    # Bias + ReLU in f32, then back to bf16 for the classifier matmuls.
    y1 = jnp.maximum(acc1 + b1_ref[...], 0.0).astype(jnp.bfloat16)   # (S, C)
    y3 = jnp.maximum(acc3 + b3_ref[...], 0.0).astype(jnp.bfloat16)
    y5 = jnp.maximum(acc5 + b5_ref[...], 0.0).astype(jnp.bfloat16)

    # TODO(synk): nn.Dropout(0.3) (and the unused query_drop_out) are identity
    # at inference; omitted.

    # Classifier fused with the (never materialized) channel concat.
    # dot_general contracts wc dim 0 with y dim 1 -> (2, S): no transpose of
    # the big y tile and a lane-dense (S on lanes) output.
    dn = (((0,), (1,)), ((), ()))
    logits = jax.lax.dot_general(wc1_ref[...], y1, dn,
                                 preferred_element_type=jnp.float32)
    logits += jax.lax.dot_general(wc3_ref[...], y3, dn,
                                  preferred_element_type=jnp.float32)
    logits += jax.lax.dot_general(wc5_ref[...], y5, dn,
                                  preferred_element_type=jnp.float32)
    logits += bc_ref[...]                               # (2, 1) broadcast
    o_ref[...] = logits.astype(o_ref.dtype)             # (2, S)


# ------------------------------ Wrappers ----------------------------------- #
def _const_spec(shape):
    nd = len(shape)
    return pl.BlockSpec(shape, lambda b: (0,) * nd)     # resident across grid


def conv_model_head(x, params):
    """x: (B, S, H) f32 sequence_output -> (start_logits, end_logits), (B, S)."""
    xp = jnp.pad(x, ((0, 0), (PAD, PAD), (0, 0))).astype(jnp.bfloat16)
    w1 = params["w1"].astype(jnp.bfloat16)
    w3 = params["w3"].astype(jnp.bfloat16)
    w5 = params["w5"].astype(jnp.bfloat16)
    wc = params["wc"].astype(jnp.bfloat16)
    wc1, wc3, wc5 = wc[:C_CONV], wc[C_CONV:2 * C_CONV], wc[2 * C_CONV:]
    bc = params["bc"].reshape(NUM_LABELS, 1)

    logits_t = pl.pallas_call(
        conv_head_kernel,
        grid=(B,),
        in_specs=[
            pl.BlockSpec((None, S_LEN + 2 * PAD, HID), lambda b: (b, 0, 0)),
            _const_spec(w1.shape), _const_spec(params["b1"].shape),
            _const_spec(w3.shape), _const_spec(params["b3"].shape),
            _const_spec(w5.shape), _const_spec(params["b5"].shape),
            _const_spec(wc1.shape), _const_spec(wc3.shape),
            _const_spec(wc5.shape), _const_spec(bc.shape),
        ],
        out_specs=pl.BlockSpec((None, NUM_LABELS, S_LEN), lambda b: (b, 0, 0)),
        out_shape=jax.ShapeDtypeStruct((B, NUM_LABELS, S_LEN), jnp.float32),
        # NOTE: at real sizes (S=512, H=768, C=1024) add
        # vmem_limit_bytes=48<<20 here (v5e default scoped VMEM is 16 MiB) and
        # budget tiles against v7x's 64 MiB physical VMEM (not v6e's 128 MiB).
        compiler_params=pltpu.CompilerParams(
            dimension_semantics=("parallel",)),
    )(xp, w1, params["b1"], w3, params["b3"], w5, params["b5"],
      wc1, wc3, wc5, bc)

    return logits_t[:, 0, :], logits_t[:, 1, :]


# ------------------------------ Plain-JAX glue ------------------------------ #
def backbone_stub(input_ids, emb, pos_emb):
    # TODO(synk): the HuggingFace pretrained AutoModel backbone has no clean
    # Pallas equivalent; replaced by a deterministic embedding stand-in that
    # produces sequence_output of shape (B, S, H).
    return jnp.tanh(emb[input_ids] + pos_emb[None, :, :])


def conv_model_forward(input_ids, params):
    sequence_output = backbone_stub(input_ids, params["emb"], params["pos_emb"])
    return conv_model_head(sequence_output, params)


# Pure f32 JAX reference (same math as the torch forward) for correctness.
def reference_forward(input_ids, params):
    x = backbone_stub(input_ids, params["emb"], params["pos_emb"])
    xp = jnp.pad(x, ((0, 0), (PAD, PAD), (0, 0)))

    def branch(taps, bias, offsets):
        acc = jnp.zeros((B, S_LEN, C_CONV), jnp.float32)
        for w_k, off in zip(taps, offsets):
            acc = acc + jnp.einsum("bsh,hc->bsc",
                                   xp[:, off:off + S_LEN, :], w_k)
        return jnp.maximum(acc + bias[None], 0.0)

    y1 = branch([params["w1"]], params["b1"], [PAD])
    y3 = branch(list(params["w3"]), params["b3"], [1, 2, 3])
    y5 = branch(list(params["w5"]), params["b5"], [0, 1, 2, 3, 4])
    y = jnp.concatenate([y1, y3, y5], axis=-1)            # (B, S, 3C)
    logits = jnp.einsum("bsc,cn->bsn", y, params["wc"]) + params["bc"][None, None]
    return logits[..., 0], logits[..., 1]


def init_params(key):
    ks = jax.random.split(key, 10)
    n = lambda k, shp, s=0.05: jax.random.normal(k, shp, jnp.float32) * s
    return {
        "emb": n(ks[0], (VOCAB, HID), 1.0),
        "pos_emb": n(ks[1], (S_LEN, HID), 0.1),
        "w1": n(ks[2], (HID, C_CONV)),                      # conv1d k=1
        "b1": n(ks[3], (1, C_CONV), 0.02),
        "w3": n(ks[4], (3, HID, C_CONV)),                   # conv1d k=3 taps
        "b3": n(ks[5], (1, C_CONV), 0.02),
        "w5": n(ks[6], (5, HID, C_CONV)),                   # conv1d k=5 taps
        "b5": n(ks[7], (1, C_CONV), 0.02),
        "wc": n(ks[8], (3 * C_CONV, NUM_LABELS)),           # classify_layer
        "bc": n(ks[9], (NUM_LABELS,), 0.02),
    }


if __name__ == "__main__":
    key = jax.random.PRNGKey(0)
    k_ids, k_params = jax.random.split(key)

    params = init_params(k_params)
    input_ids = jax.random.randint(k_ids, (B, S_LEN), 0, VOCAB, dtype=jnp.int32)

    start_logits, end_logits = conv_model_forward(input_ids, params)
    jax.block_until_ready((start_logits, end_logits))

    ref_start, ref_end = reference_forward(input_ids, params)
    assert start_logits.shape == (B, S_LEN) and end_logits.shape == (B, S_LEN)
    # bf16 MXU operands vs f32 reference -> loosened tolerance.
    assert jnp.allclose(start_logits, ref_start, atol=2e-2, rtol=2e-2)
    assert jnp.allclose(end_logits, ref_end, atol=2e-2, rtol=2e-2)

    print("KERNEL_OK")
</pallas_src>

<mosaic_0001>
module attributes {stable_mosaic.version = 11 : i64} {
  func.func @conv_head_kernel(%arg0: i32, %arg1: memref<1x20x128xbf16, #tpu.memory_space<vmem>>, %arg2: memref<128x128xbf16, #tpu.memory_space<vmem>>, %arg3: memref<1x128xf32, #tpu.memory_space<vmem>>, %arg4: memref<3x128x128xbf16, #tpu.memory_space<vmem>>, %arg5: memref<1x128xf32, #tpu.memory_space<vmem>>, %arg6: memref<5x128x128xbf16, #tpu.memory_space<vmem>>, %arg7: memref<1x128xf32, #tpu.memory_space<vmem>>, %arg8: memref<128x2xbf16, #tpu.memory_space<vmem>>, %arg9: memref<128x2xbf16, #tpu.memory_space<vmem>>, %arg10: memref<128x2xbf16, #tpu.memory_space<vmem>>, %arg11: memref<2x1xf32, #tpu.memory_space<vmem>>, %arg12: memref<1x2x16xf32, #tpu.memory_space<vmem>>) attributes {dimension_semantics = [#tpu.dimension_semantics<parallel>], iteration_bounds = array<i64: 2>, scalar_prefetch = 0 : i64, scratch_operands = 0 : i64, tpu.core_type = #tpu.core_type<tc>, window_params = [{transform_indices = @transform_0, window_bounds = array<i64: 1, 20, 128>}, {pipeline_mode = #tpu.pipeline_mode<synchronous>, transform_indices = @transform_1, window_bounds = array<i64: 128, 128>}, {pipeline_mode = #tpu.pipeline_mode<synchronous>, transform_indices = @transform_2, window_bounds = array<i64: 1, 128>}, {pipeline_mode = #tpu.pipeline_mode<synchronous>, transform_indices = @transform_3, window_bounds = array<i64: 3, 128, 128>}, {pipeline_mode = #tpu.pipeline_mode<synchronous>, transform_indices = @transform_4, window_bounds = array<i64: 1, 128>}, {pipeline_mode = #tpu.pipeline_mode<synchronous>, transform_indices = @transform_5, window_bounds = array<i64: 5, 128, 128>}, {pipeline_mode = #tpu.pipeline_mode<synchronous>, transform_indices = @transform_6, window_bounds = array<i64: 1, 128>}, {pipeline_mode = #tpu.pipeline_mode<synchronous>, transform_indices = @transform_7, window_bounds = array<i64: 128, 2>}, {pipeline_mode = #tpu.pipeline_mode<synchronous>, transform_indices = @transform_8, window_bounds = array<i64: 128, 2>}, {pipeline_mode = #tpu.pipeline_mode<synchronous>, transform_indices = @transform_9, window_bounds = array<i64: 128, 2>}, {pipeline_mode = #tpu.pipeline_mode<synchronous>, transform_indices = @transform_10, window_bounds = array<i64: 2, 1>}, {transform_indices = @transform_11, window_bounds = array<i64: 1, 2, 16>}]} {
    %c0 = arith.constant 0 : index
    %c0_0 = arith.constant 0 : index
    %c0_1 = arith.constant 0 : index
    %0 = vector.load %arg1[%c0, %c0_0, %c0_1] : memref<1x20x128xbf16, #tpu.memory_space<vmem>>, vector<1x20x128xbf16>
    %1 = vector.shape_cast %0 : vector<1x20x128xbf16> to vector<20x128xbf16>
    %2 = vector.extract_strided_slice %1 {offsets = [2, 0], sizes = [16, 128], strides = [1, 1]} : vector<20x128xbf16> to vector<16x128xbf16>
    %c0_2 = arith.constant 0 : index
    %c0_3 = arith.constant 0 : index
    %3 = vector.load %arg2[%c0_2, %c0_3] : memref<128x128xbf16, #tpu.memory_space<vmem>>, vector<128x128xbf16>
    %cst = arith.constant dense<0.000000e+00> : vector<16x128xf32>
    %4 = tpu.matmul %2, %3, %cst {dimension_numbers = #tpu.dot_dimension_numbers<[1], [0], [0], [1], [0, 0, 1, 1], [], []>} : vector<16x128xbf16>, vector<128x128xbf16>, vector<16x128xf32> -> vector<16x128xf32>
    %5 = vector.extract_strided_slice %1 {offsets = [1, 0], sizes = [16, 128], strides = [1, 1]} : vector<20x128xbf16> to vector<16x128xbf16>
    %c0_4 = arith.constant 0 : index
    %c0_5 = arith.constant 0 : index
    %c0_6 = arith.constant 0 : index
    %6 = vector.load %arg4[%c0_4, %c0_5, %c0_6] : memref<3x128x128xbf16, #tpu.memory_space<vmem>>, vector<1x128x128xbf16>
    %7 = vector.shape_cast %6 : vector<1x128x128xbf16> to vector<128x128xbf16>
    %cst_7 = arith.constant dense<0.000000e+00> : vector<16x128xf32>
    %8 = tpu.matmul %5, %7, %cst_7 {dimension_numbers = #tpu.dot_dimension_numbers<[1], [0], [0], [1], [0, 0, 1, 1], [], []>} : vector<16x128xbf16>, vector<128x128xbf16>, vector<16x128xf32> -> vector<16x128xf32>
    %9 = vector.extract_strided_slice %1 {offsets = [2, 0], sizes = [16, 128], strides = [1, 1]} : vector<20x128xbf16> to vector<16x128xbf16>
    %c1 = arith.constant 1 : index
    %c0_8 = arith.constant 0 : index
    %c0_9 = arith.constant 0 : index
    %10 = vector.load %arg4[%c1, %c0_8, %c0_9] : memref<3x128x128xbf16, #tpu.memory_space<vmem>>, vector<1x128x128xbf16>
    %11 = vector.shape_cast %10 : vector<1x128x128xbf16> to vector<128x128xbf16>
    %cst_10 = arith.constant dense<0.000000e+00> : vector<16x128xf32>
    %12 = tpu.matmul %9, %11, %cst_10 {dimension_numbers = #tpu.dot_dimension_numbers<[1], [0], [0], [1], [0, 0, 1, 1], [], []>} : vector<16x128xbf16>, vector<128x128xbf16>, vector<16x128xf32> -> vector<16x128xf32>
    %13 = arith.addf %8, %12 : vector<16x128xf32>
    %14 = vector.extract_strided_slice %1 {offsets = [3, 0], sizes = [16, 128], strides = [1, 1]} : vector<20x128xbf16> to vector<16x128xbf16>
    %c2 = arith.constant 2 : index
    %c0_11 = arith.constant 0 : index
    %c0_12 = arith.constant 0 : index
    %15 = vector.load %arg4[%c2, %c0_11, %c0_12] : memref<3x128x128xbf16, #tpu.memory_space<vmem>>, vector<1x128x128xbf16>
    %16 = vector.shape_cast %15 : vector<1x128x128xbf16> to vector<128x128xbf16>
    %cst_13 = arith.constant dense<0.000000e+00> : vector<16x128xf32>
    %17 = tpu.matmul %14, %16, %cst_13 {dimension_numbers = #tpu.dot_dimension_numbers<[1], [0], [0], [1], [0, 0, 1, 1], [], []>} : vector<16x128xbf16>, vector<128x128xbf16>, vector<16x128xf32> -> vector<16x128xf32>
    %18 = arith.addf %13, %17 : vector<16x128xf32>
    %19 = vector.extract_strided_slice %1 {offsets = [0, 0], sizes = [16, 128], strides = [1, 1]} : vector<20x128xbf16> to vector<16x128xbf16>
    %c0_14 = arith.constant 0 : index
    %c0_15 = arith.constant 0 : index
    %c0_16 = arith.constant 0 : index
    %20 = vector.load %arg6[%c0_14, %c0_15, %c0_16] : memref<5x128x128xbf16, #tpu.memory_space<vmem>>, vector<1x128x128xbf16>
    %21 = vector.shape_cast %20 : vector<1x128x128xbf16> to vector<128x128xbf16>
    %cst_17 = arith.constant dense<0.000000e+00> : vector<16x128xf32>
    %22 = tpu.matmul %19, %21, %cst_17 {dimension_numbers = #tpu.dot_dimension_numbers<[1], [0], [0], [1], [0, 0, 1, 1], [], []>} : vector<16x128xbf16>, vector<128x128xbf16>, vector<16x128xf32> -> vector<16x128xf32>
    %23 = vector.extract_strided_slice %1 {offsets = [1, 0], sizes = [16, 128], strides = [1, 1]} : vector<20x128xbf16> to vector<16x128xbf16>
    %c1_18 = arith.constant 1 : index
    %c0_19 = arith.constant 0 : index
    %c0_20 = arith.constant 0 : index
    %24 = vector.load %arg6[%c1_18, %c0_19, %c0_20] : memref<5x128x128xbf16, #tpu.memory_space<vmem>>, vector<1x128x128xbf16>
    %25 = vector.shape_cast %24 : vector<1x128x128xbf16> to vector<128x128xbf16>
    %cst_21 = arith.constant dense<0.000000e+00> : vector<16x128xf32>
    %26 = tpu.matmul %23, %25, %cst_21 {dimension_numbers = #tpu.dot_dimension_numbers<[1], [0], [0], [1], [0, 0, 1, 1], [], []>} : vector<16x128xbf16>, vector<128x128xbf16>, vector<16x128xf32> -> vector<16x128xf32>
    %27 = arith.addf %22, %26 : vector<16x128xf32>
    %28 = vector.extract_strided_slice %1 {offsets = [2, 0], sizes = [16, 128], strides = [1, 1]} : vector<20x128xbf16> to vector<16x128xbf16>
    %c2_22 = arith.constant 2 : index
    %c0_23 = arith.constant 0 : index
    %c0_24 = arith.constant 0 : index
    %29 = vector.load %arg6[%c2_22, %c0_23, %c0_24] : memref<5x128x128xbf16, #tpu.memory_space<vmem>>, vector<1x128x128xbf16>
    %30 = vector.shape_cast %29 : vector<1x128x128xbf16> to vector<128x128xbf16>
    %cst_25 = arith.constant dense<0.000000e+00> : vector<16x128xf32>
    %31 = tpu.matmul %28, %30, %cst_25 {dimension_numbers = #tpu.dot_dimension_numbers<[1], [0], [0], [1], [0, 0, 1, 1], [], []>} : vector<16x128xbf16>, vector<128x128xbf16>, vector<16x128xf32> -> vector<16x128xf32>
    %32 = arith.addf %27, %31 : vector<16x128xf32>
    %33 = vector.extract_strided_slice %1 {offsets = [3, 0], sizes = [16, 128], strides = [1, 1]} : vector<20x128xbf16> to vector<16x128xbf16>
    %c3 = arith.constant 3 : index
    %c0_26 = arith.constant 0 : index
    %c0_27 = arith.constant 0 : index
    %34 = vector.load %arg6[%c3, %c0_26, %c0_27] : memref<5x128x128xbf16, #tpu.memory_space<vmem>>, vector<1x128x128xbf16>
    %35 = vector.shape_cast %34 : vector<1x128x128xbf16> to vector<128x128xbf16>
    %cst_28 = arith.constant dense<0.000000e+00> : vector<16x128xf32>
    %36 = tpu.matmul %33, %35, %cst_28 {dimension_numbers = #tpu.dot_dimension_numbers<[1], [0], [0], [1], [0, 0, 1, 1], [], []>} : vector<16x128xbf16>, vector<128x128xbf16>, vector<16x128xf32> -> vector<16x128xf32>
    %37 = arith.addf %32, %36 : vector<16x128xf32>
    %38 = vector.extract_strided_slice %1 {offsets = [4, 0], sizes = [16, 128], strides = [1, 1]} : vector<20x128xbf16> to vector<16x128xbf16>
    %c4 = arith.constant 4 : index
    %c0_29 = arith.constant 0 : index
    %c0_30 = arith.constant 0 : index
    %39 = vector.load %arg6[%c4, %c0_29, %c0_30] : memref<5x128x128xbf16, #tpu.memory_space<vmem>>, vector<1x128x128xbf16>
    %40 = vector.shape_cast %39 : vector<1x128x128xbf16> to vector<128x128xbf16>
    %cst_31 = arith.constant dense<0.000000e+00> : vector<16x128xf32>
    %41 = tpu.matmul %38, %40, %cst_31 {dimension_numbers = #tpu.dot_dimension_numbers<[1], [0], [0], [1], [0, 0, 1, 1], [], []>} : vector<16x128xbf16>, vector<128x128xbf16>, vector<16x128xf32> -> vector<16x128xf32>
    %42 = arith.addf %37, %41 : vector<16x128xf32>
    %c0_32 = arith.constant 0 : index
    %c0_33 = arith.constant 0 : index
    %43 = vector.load %arg3[%c0_32, %c0_33] : memref<1x128xf32, #tpu.memory_space<vmem>>, vector<1x128xf32>
    %44 = vector.broadcast %43 : vector<1x128xf32> to vector<16x128xf32>
    %45 = arith.addf %4, %44 : vector<16x128xf32>
    %cst_34 = arith.constant 0.000000e+00 : f32
    %46 = vector.broadcast %cst_34 : f32 to vector<16x128xf32>
    %47 = arith.maximumf %45, %46 : vector<16x128xf32>
    %48 = arith.truncf %47 : vector<16x128xf32> to vector<16x128xbf16>
    %c0_35 = arith.constant 0 : index
    %c0_36 = arith.constant 0 : index
    %49 = vector.load %arg5[%c0_35, %c0_36] : memref<1x128xf32, #tpu.memory_space<vmem>>, vector<1x128xf32>
    %50 = vector.broadcast %49 : vector<1x128xf32> to vector<16x128xf32>
    %51 = arith.addf %18, %50 : vector<16x128xf32>
    %cst_37 = arith.constant 0.000000e+00 : f32
    %52 = vector.broadcast %cst_37 : f32 to vector<16x128xf32>
    %53 = arith.maximumf %51, %52 : vector<16x128xf32>
    %54 = arith.truncf %53 : vector<16x128xf32> to vector<16x128xbf16>
    %c0_38 = arith.constant 0 : index
    %c0_39 = arith.constant 0 : index
    %55 = vector.load %arg7[%c0_38, %c0_39] : memref<1x128xf32, #tpu.memory_space<vmem>>, vector<1x128xf32>
    %56 = vector.broadcast %55 : vector<1x128xf32> to vector<16x128xf32>
    %57 = arith.addf %42, %56 : vector<16x128xf32>
    %cst_40 = arith.constant 0.000000e+00 : f32
    %58 = vector.broadcast %cst_40 : f32 to vector<16x128xf32>
    %59 = arith.maximumf %57, %58 : vector<16x128xf32>
    %60 = arith.truncf %59 : vector<16x128xf32> to vector<16x128xbf16>
    %c0_41 = arith.constant 0 : index
    %c0_42 = arith.constant 0 : index
    %61 = vector.load %arg8[%c0_41, %c0_42] : memref<128x2xbf16, #tpu.memory_space<vmem>>, vector<128x2xbf16>
    %cst_43 = arith.constant dense<0.000000e+00> : vector<2x16xf32>
    %62 = tpu.matmul %61, %48, %cst_43 {dimension_numbers = #tpu.dot_dimension_numbers<[0], [1], [1], [0], [0, 1, 1, 0], [], []>} : vector<128x2xbf16>, vector<16x128xbf16>, vector<2x16xf32> -> vector<2x16xf32>
    %c0_44 = arith.constant 0 : index
    %c0_45 = arith.constant 0 : index
    %63 = vector.load %arg9[%c0_44, %c0_45] : memref<128x2xbf16, #tpu.memory_space<vmem>>, vector<128x2xbf16>
    %cst_46 = arith.constant dense<0.000000e+00> : vector<2x16xf32>
    %64 = tpu.matmul %63, %54, %cst_46 {dimension_numbers = #tpu.dot_dimension_numbers<[0], [1], [1], [0], [0, 1, 1, 0], [], []>} : vector<128x2xbf16>, vector<16x128xbf16>, vector<2x16xf32> -> vector<2x16xf32>
    %65 = arith.addf %62, %64 : vector<2x16xf32>
    %c0_47 = arith.constant 0 : index
    %c0_48 = arith.constant 0 : index
    %66 = vector.load %arg10[%c0_47, %c0_48] : memref<128x2xbf16, #tpu.memory_space<vmem>>, vector<128x2xbf16>
    %cst_49 = arith.constant dense<0.000000e+00> : vector<2x16xf32>
    %67 = tpu.matmul %66, %60, %cst_49 {dimension_numbers = #tpu.dot_dimension_numbers<[0], [1], [1], [0], [0, 1, 1, 0], [], []>} : vector<128x2xbf16>, vector<16x128xbf16>, vector<2x16xf32> -> vector<2x16xf32>
    %68 = arith.addf %65, %67 : vector<2x16xf32>
    %c0_50 = arith.constant 0 : index
    %c0_51 = arith.constant 0 : index
    %69 = vector.load %arg11[%c0_50, %c0_51] : memref<2x1xf32, #tpu.memory_space<vmem>>, vector<2x1xf32>
    %70 = vector.broadcast %69 : vector<2x1xf32> to vector<2x16xf32>
    %71 = arith.addf %68, %70 : vector<2x16xf32>
    %c0_52 = arith.constant 0 : index
    %c0_53 = arith.constant 0 : index
    %c0_54 = arith.constant 0 : index
    %72 = vector.load %arg12[%c0_52, %c0_53, %c0_54] : memref<1x2x16xf32, #tpu.memory_space<vmem>>, vector<1x2x16xf32>
    %73 = vector.shape_cast %72 : vector<1x2x16xf32> to vector<2x16xf32>
    %74 = vector.shape_cast %71 : vector<2x16xf32> to vector<1x2x16xf32>
    tpu.vector_store %arg12[%c0_52, %c0_53, %c0_54], %74 {strides = array<i32>} : memref<1x2x16xf32, #tpu.memory_space<vmem>>, vector<1x2x16xf32>,
    return
  }
  func.func @transform_0(%arg0: i32) -> (i32, i32, i32) {
    %c0_i32 = arith.constant 0 : i32
    %c0_i32_0 = arith.constant 0 : i32
    %c0_i32_1 = arith.constant 0 : i32
    return %arg0, %c0_i32, %c0_i32_0 : i32, i32, i32
  }
  func.func @transform_1(%arg0: i32) -> (i32, i32) {
    %c0_i32 = arith.constant 0 : i32
    %c0_i32_0 = arith.constant 0 : i32
    %c0_i32_1 = arith.constant 0 : i32
    return %c0_i32, %c0_i32_0 : i32, i32
  }
  func.func @transform_2(%arg0: i32) -> (i32, i32) {
    %c0_i32 = arith.constant 0 : i32
    %c0_i32_0 = arith.constant 0 : i32
    %c0_i32_1 = arith.constant 0 : i32
    return %c0_i32, %c0_i32_0 : i32, i32
  }
  func.func @transform_3(%arg0: i32) -> (i32, i32, i32) {
    %c0_i32 = arith.constant 0 : i32
    %c0_i32_0 = arith.constant 0 : i32
    %c0_i32_1 = arith.constant 0 : i32
    %c0_i32_2 = arith.constant 0 : i32
    return %c0_i32, %c0_i32_0, %c0_i32_1 : i32, i32, i32
  }
  func.func @transform_4(%arg0: i32) -> (i32, i32) {
    %c0_i32 = arith.constant 0 : i32
    %c0_i32_0 = arith.constant 0 : i32
    %c0_i32_1 = arith.constant 0 : i32
    return %c0_i32, %c0_i32_0 : i32, i32
  }
  func.func @transform_5(%arg0: i32) -> (i32, i32, i32) {
    %c0_i32 = arith.constant 0 : i32
    %c0_i32_0 = arith.constant 0 : i32
    %c0_i32_1 = arith.constant 0 : i32
    %c0_i32_2 = arith.constant 0 : i32
    return %c0_i32, %c0_i32_0, %c0_i32_1 : i32, i32, i32
  }
  func.func @transform_6(%arg0: i32) -> (i32, i32) {
    %c0_i32 = arith.constant 0 : i32
    %c0_i32_0 = arith.constant 0 : i32
    %c0_i32_1 = arith.constant 0 : i32
    return %c0_i32, %c0_i32_0 : i32, i32
  }
  func.func @transform_7(%arg0: i32) -> (i32, i32) {
    %c0_i32 = arith.constant 0 : i32
    %c0_i32_0 = arith.constant 0 : i32
    %c0_i32_1 = arith.constant 0 : i32
    return %c0_i32, %c0_i32_0 : i32, i32
  }
  func.func @transform_8(%arg0: i32) -> (i32, i32) {
    %c0_i32 = arith.constant 0 : i32
    %c0_i32_0 = arith.constant 0 : i32
    %c0_i32_1 = arith.constant 0 : i32
    return %c0_i32, %c0_i32_0 : i32, i32
  }
  func.func @transform_9(%arg0: i32) -> (i32, i32) {
    %c0_i32 = arith.constant 0 : i32
    %c0_i32_0 = arith.constant 0 : i32
    %c0_i32_1 = arith.constant 0 : i32
    return %c0_i32, %c0_i32_0 : i32, i32
  }
  func.func @transform_10(%arg0: i32) -> (i32, i32) {
    %c0_i32 = arith.constant 0 : i32
    %c0_i32_0 = arith.constant 0 : i32
    %c0_i32_1 = arith.constant 0 : i32
    return %c0_i32, %c0_i32_0 : i32, i32
  }
  func.func @transform_11(%arg0: i32) -> (i32, i32, i32) {
    %c0_i32 = arith.constant 0 : i32
    %c0_i32_0 = arith.constant 0 : i32
    %c0_i32_1 = arith.constant 0 : i32
    return %arg0, %c0_i32, %c0_i32_0 : i32, i32, i32
  }
}

</mosaic_0001>

<bundles_post_ra>
// kernel: tpu_custom_call.1
= control target key start
LH: loop header
LB: loop body
LE: loop exit
PB: predicated region body
PF: predicated region fallthrough
CT: control target
= control target key end

     0   :  { %16 = vsyncpa [#allocation3], 0  ;;  %s3172_s0 = inlined_call_operand.vmem [shape: bf16[2,20,128], index: 0, kind: input, shape index: {}]   ;;  %s3173_s1 = inlined_call_operand.hbm [shape: bf16[128,128], index: 1, kind: input, shape index: {}]   ;;  %s3174_s2 = inlined_call_operand.vmem [shape: f32[1,128], index: 2, kind: input, shape index: {}]   ;;  %s3175_s3 = inlined_call_operand.vmem [shape: bf16[3,128,128], index: 3, kind: input, shape index: {}]   ;;  %s3176_s4 = inlined_call_operand.vmem [shape: f32[1,128], index: 4, kind: input, shape index: {}]   ;;  %s3177_s5 = inlined_call_operand.hbm [shape: bf16[5,128,128], index: 5, kind: input, shape index: {}]   ;;  %s3178_s6 = inlined_call_operand.vmem [shape: f32[1,128], index: 6, kind: input, shape index: {}]   ;;  %s3179_s7 = inlined_call_operand.vmem [shape: bf16[128,2], index: 7, kind: input, shape index: {}]   ;;  %s3180_s8 = inlined_call_operand.vmem [shape: bf16[128,2], index: 8, kind: input, shape index: {}]   ;;  %s3181_s9 = inlined_call_operand.vmem [shape: bf16[128,2], index: 9, kind: input, shape index: {}]   ;;  %s3182_s10 = inlined_call_operand.vmem [shape: f32[2,1], index: 10, kind: input, shape index: {}]   ;;  %s3183_s11 = inlined_call_operand.hbm [shape: f32[2,2,16], index: 11, kind: output, shape index: {}]  }
   0x1   :  { %17 = vsyncpa [#allocation6], 0 }
   0x2   :  { %18 = vsyncpa [#allocation4], 0 }
   0x3   :  { %20 = vsyncpa [#allocation4 + $0x1], 0  ;;  %s2715_s17 = smov 0   ;;  %s2717_s18 = smov 0  }
   0x4   :  { %s2719_s19 = smov 0   ;;  %s2721_s20 = smov 0  }
   0x5 LB: > { %3192 = sst [smem:[#allocation11_spill]] %s2633_s17  ;;  %s2736_s21 = sadd.s32 4294967295, %s2645_s20   ;;  %s2645_s20 = sphi %s2721_s20, %s3210_s20   ;;  %s2641_s19 = sphi %s2719_s19, %s3212_s19   ;;  %s2637_s18 = sphi %s2717_s18, %s3214_s18   ;;  %s2633_s17 = sphi %s2715_s17, %s3213_s17  }
   0x6   : > { %3193 = sst [smem:[#allocation12_spill]] %s2641_s19  ;;  %s1921_s22 = sadd.s32 4294967294, %s2645_s20  }
   0x7   : > { %s2740_s23 = sadd.s32 1, %s2645_s20   ;;  %s269_s24 = sadd.s32 1, %s2641_s19 }
   0x8   : > { %3194 = sst [smem:[#allocation13_spill]] %s2740_s23  ;;  %s266_s25 = ssub.s32 %s2645_s20, %s2740_s23 }
   0x9   : > { %p279_p0 = scmp.ne.s32.totalorder %s2641_s19, %s2637_s18  ;;  %p267_p1 = scmp.eq.s32.totalorder %s266_s25, 0 }
   0xa   : > { %p280_p2 = scmp.eq.s32.totalorder %s2736_s21, 1  ;;  %p285_p3 = scmp.ne.s32.totalorder %s2637_s18, %s2633_s17 }
   0xb   : > { %p286_p4 = scmp.eq.s32.totalorder %s1921_s22, 1  ;;  %p1922_p7 = scmp.ge.s32.totalorder %s2645_s20, 1 }
   0xc   : > { %s2751_s26 = scalar_select %p267_p1, %s2641_s19, %s269_s24  }
   0xd   : > { %p2753_p5 = por %p280_p2, %p279_p0  ;;  %p2757_p6 = por %p286_p4, %p285_p3 }
   0xe   : > { %3195 = sst [smem:[#allocation14_spill]] %s2751_s26  ;;  %p293_p8 = scmp.lt.s32.totalorder %s2645_s20, 3 }
   0xf   : > { %s3196_s27 = scalar_select %p2753_p5, 1, 0 }
  0x10   : > { %s3197_s28 = scalar_select %p2757_p6, 1, 0 }
  0x11   : > { %p3185_p9 = scmp.eq.s32.totalorder %s2736_s21, 0  ;;  %p2764_p10 = pnand %p1922_p7, %p293_p8 }
  0x12   : > { %3198 = sst [smem:[#allocation15_spill]] %s3197_s28  ;;  %s2647_s30 = smov [#allocation2]  }
  0x13   : > { %s3199_s29 = scalar_select %p2764_p10, 1, 0 }
  0x14   : > { %s305_s12 = sshll.u32 %s2647_s30, 4  ;;  %p2364_p11 = pneg %p2764_p10  ;;  %s306_s12 = int_to_ptr.vmem [resolvable:$true] %s305_s12 }
  0x15   : > { %s2648_s14 = smov [#allocation5]   ;;  %s2519_s24 = scalar_lea.hbm %s3173_s1, 1024 }
  0x16   : > { %p2772_p12 = pnand %p3185_p9, %p2364_p11  ;;  %s327_s15 = sshll.u32 %s2648_s14, 4  ;;  %s2776_s15 = int_to_ptr.vmem [resolvable:$true] %s327_s15 }
  0x17   : > { %p2520_p13 = scmp.ne.s32.totalorder %s3173_s1, %s2519_s24  ;;  %p2526_p3 = scmp.lt.u32.totalorder %s2519_s24, %s3173_s1 }
  0x18   : > { %p2521_p0 = pneg %p2772_p12 }
  0x1a   : > { %p2522_p1 = pnand %p2521_p0, %p2520_p13 }
  0x1c   : > { %p2523_p2 = pneg %p2522_p1 }
  0x1e   : > { %p2528_p4 = pnand %p2526_p3, %p2523_p2 }
  0x20   : > { %2531 = shalt.err (!%p2528_p4)
}
  0x21   : > { %s2532_s14 = scalar_lea.vmem %s306_s12, 1024  ;;  %p2540_p9 = scmp.lt.s32.totalorder %s306_s12, %s306_s12 }
  0x22   : > { %p2533_p7 = scmp.ne.s32.totalorder %s306_s12, %s2532_s14  ;;  %p2541_p6 = scmp.lt.s32.totalorder %s2532_s14, %s2532_s14 }
  0x24   : > { %p2535_p8 = pnand %p2533_p7, %p2521_p0  ;;  %p2542_p5 = por %p2541_p6, %p2540_p9 }
  0x26   : > { %p2536_p11 = pneg %p2535_p8 }
  0x28   : > { %p2543_p10 = pnand %p2542_p5, %p2536_p11 }
  0x2a   : > { %2546 = shalt.err (!%p2543_p10)
}
  0x2b   : > { %s2649_s16 = smov 64   ;;  %s2650_s22 = smov 4  }
  0x2c   : > { %2367 = dma.hbm_to_vmem [thread:$0]  (!%p2772_p12), %s3173_s1, 1024, %s306_s12, [#allocation3], %s2649_s16, %s2649_s16, %s2650_s22  }
  0x2d   : > { %s2547_s30 = scalar_lea.hbm %s3177_s5, 5120 }
  0x2e   : > { %p2548_p13 = scmp.ne.s32.totalorder %s3177_s5, %s2547_s30  ;;  %p2554_p9 = scmp.lt.u32.totalorder %s2547_s30, %s3177_s5 }
  0x30   : > { %p2550_p5 = pnand %p2548_p13, %p2521_p0 }
  0x32   : > { %p2551_p6 = pneg %p2550_p5 }
  0x34   : > { %p2556_p10 = pnand %p2554_p9, %p2551_p6 }
  0x36   : > { %2559 = shalt.err (!%p2556_p10)
}
  0x37   : > { %s2560_s12 = scalar_lea.vmem %s2776_s15, 5120  ;;  %p2568_p4 = scmp.lt.s32.totalorder %s2776_s15, %s2776_s15 }
  0x38   : > { %p2561_p1 = scmp.ne.s32.totalorder %s2776_s15, %s2560_s12  ;;  %p2569_p7 = scmp.lt.s32.totalorder %s2560_s12, %s2560_s12 }
  0x3a   : > { %p2563_p2 = pnand %p2561_p1, %p2521_p0  ;;  %p2570_p8 = por %p2569_p7, %p2568_p4 }
  0x3c   : > { %p2564_p3 = pneg %p2563_p2 }
  0x3e   : > { %p2571_p11 = pnand %p2570_p8, %p2564_p3 }
  0x40   : > { %2574 = shalt.err (!%p2571_p11)
}
  0x41   : > { %2370 = dma.hbm_to_vmem [thread:$0]  (!%p2772_p12), %s3177_s5, 5120, %s2776_s15, [#allocation6], %s2649_s16, %s2649_s16, %s2650_s22  }
  0x42   : > { %p3201_p13 = scmp.ne.s32.totalorder %s3199_s29, 0 }
  0x43   : > { %p3202_p5 = scmp.eq.s32.totalorder (!%p3201_p13), %s2736_s21, 0 }
  0x44   : > { %366 = sbr.rel (%p3201_p13) target bundleno = 707 (0x2c3), region = 64 }
  0x4b   : > { %2620 = dma.done.wait (%p3202_p5), [#allocation3], 1024   ;;  %p3203_p0 = pmov %p3202_p5 }
  0x4d   : > { %2622 = vsyncadd (%p3203_p0), [#allocation3], 4294966272  ;;  %p3204_p6 = pmov %p3203_p0 }
  0x4e   : > { %p3205_p9 = pmov %p3203_p0 }
  0x4f   : > { %2624 = dma.done.wait (%p3204_p6), [#allocation6], 5120  }
  0x50   : > { %2626 = vsyncadd (%p3205_p9), [#allocation6], 4294962176  ;;  %v2651_v0 = vmov 0.0   ;;  %vm2652_vm0 = vmmov 0   ;;  %v2421_v1 = vld [vmem:[%s3175_s3 + $0x40] sm:$0xff]   ;;  %v2423_v3 = vld [vmem:[%s3175_s3 + $0x48] sm:$0xff]  }
  0x51   : > { %2155 = vmatprep.subr.bf16.mxu0 %v2651_v0  ;;  %2175 = vmatprep.subr.bf16.mxu1 %v2651_v0  ;;  %v2422_v2 = vld [vmem:[%s3175_s3] sm:$0xff]   ;;  %p410_p12 = scmp.lt.s32.totalorder %s2736_s21, 1  ;;  %v2424_v4 = vld [vmem:[%s3175_s3 + $0x8] sm:$0xff]   ;;  %v2425_v5 = vld [vmem:[%s3175_s3 + $0x50] sm:$0xff]   ;;  %vm476_vm1 = vcmask 1046528   ;;  %vm1237_vm4 = vcmask 1045504  }
  0x52   : > { %2171 = vmatprep.mubr.msk.bf16.mxu0 %vm2652_vm0, %v2651_v0  ;;  %2191 = vmatprep.mubr.msk.bf16.mxu1 %vm2652_vm0, %v2651_v0  ;;  %v2426_v6 = vld [vmem:[%s3175_s3 + $0x10] sm:$0xff]   ;;  %v2427_v7 = vld [vmem:[%s3175_s3 + $0x58] sm:$0xff]   ;;  %v2429_v9 = vld [vmem:[%s3175_s3 + $0x60] sm:$0xff]   ;;  %vm570_vm2 = vsmask.f32 7424  ;;  %s407_s16 = sand.u32 1, %s2637_s18  }
  0x53   : > { %2156 = vmatpush3.bf16.msra.mxu0 %v2421_v1  ;;  %2176 = vmatpush3.bf16.msra.mxu1 %v2422_v2  ;;  %s411_s30 = scalar_select %p410_p12, %s2736_s21, 1  ;;  %v2428_v8 = vld [vmem:[%s3175_s3 + $0x18] sm:$0xff]   ;;  %v2430_v10 = vld [vmem:[%s3175_s3 + $0x20] sm:$0xff]   ;;  %v2431_v11 = vld [vmem:[%s3175_s3 + $0x68] sm:$0xff]   ;;  %vm690_vm3 = vsmask.f32 6400 }
  0x54   : > { %2157 = vmatprep.subr.bf16.mxu0 %v2651_v0  ;;  %2177 = vmatprep.subr.bf16.mxu1 %v2651_v0  ;;  %v2432_v13 = vld [vmem:[%s3175_s3 + $0x28] sm:$0xff]   ;;  %v2433_v16 = vld [vmem:[%s3175_s3 + $0x70] sm:$0xff]   ;;  %v2435_v21 = vld [vmem:[%s3175_s3 + $0x78] sm:$0xff]   ;;  %s1929_s22 = sshll.u32 %s407_s16, 1  ;;  %s2065_s19 = sshll.u32 %s2736_s21, 5  ;;  %vm1824_vm5 = vcmask 123904  }
  0x55   : > { %s2353_s28 = smul.u32 12, %s411_s30  ;;  %v2434_v17 = vld [vmem:[%s3175_s3 + $0x30] sm:$0xff]   ;;  %v2436_v24 = vld [vmem:[%s3175_s3 + $0x38] sm:$0xff]   ;;  %v2439_v28 = vld [vmem:[%s3175_s3 + $0x80] sm:$0xff]   ;;  %s3130_s14 = scalar_lea.hbm %s3183_s11, %s2065_s19 }
  0x56   : > { %v2440_v30 = vld [vmem:[#allocation5 + $0x40] sm:$0xff]   ;;  %v2441_v31 = vld [vmem:[%s3175_s3 + $0x88] sm:$0xff]   ;;  %v2443_v33 = vld [vmem:[%s3175_s3 + $0x90] sm:$0xff]   ;;  %s1827_s21 = scalar_lea.sflag [#allocation4], %s407_s16  ;;  %p3206_p1 = scmp.ne.s32.totalorder %s3196_s27, 0 }
  0x57   : > { %2158 = vmatpush3.bf16.msra.mxu0 %v2423_v3  ;;  %2178 = vmatpush3.bf16.msra.mxu1 %v2424_v4  ;;  %s414_s26 = scalar_lea.vmem %s3172_s0, %s2353_s28  ;;  %v2442_v32 = vld [vmem:[#allocation5 + $0x48] sm:$0xff]   ;;  %v2444_v34 = vld [vmem:[#allocation5 + $0x50] sm:$0xff]   ;;  %v2445_v35 = vld [vmem:[%s3175_s3 + $0x98] sm:$0xff]   ;;  %s2654_s17 = smov [#allocation7]  }
  0x58   : > { %2159 = vmatprep.subr.bf16.mxu0 %v2651_v0  ;;  %2179 = vmatprep.subr.bf16.mxu1 %v2651_v0  ;;  %v2887_v12 = vld [vmem:[%s414_s26] sm:$0xff]   ;;  %v2893_v14 = vld [vmem:[%s414_s26 + $0x8] ss:$0 sps:$4 sm:$0x33]   ;;  %v2446_v36 = vld [vmem:[#allocation5 + $0x58] sm:$0xff]   ;;  %s409_s26 = scalar_lea.vmem [#allocation7], %s1929_s22 }
  0x59   : > { %v574_v15 = vshll.u32 %v2887_v12, 16  ;;  %v572_v18 = vshrl.u32 %v2887_v12, 16  ;;  %v579_v20 = vshll.u32 %v2893_v14, 16  ;;  %v477_v22 = vrot.slane %v2887_v12, 1  ;;  %v2447_v37 = vld [vmem:[%s3175_s3 + $0xa0] sm:$0xff]   ;;  %v2449_v39 = vld [vmem:[%s3175_s3 + $0xa8] sm:$0xff]  }
  0x5a   : > { %v478_v23 = vrot.slane %v2893_v14, 1  ;;  %v2448_v38 = vld [vmem:[#allocation5 + $0x60] sm:$0xff]   ;;  %v694_v40 = vshrl.u32 %v2893_v14, 16  ;;  %v2450_v41 = vld [vmem:[#allocation5 + $0x68] sm:$0xff]   ;;  %v2451_v45 = vld [vmem:[%s3175_s3 + $0xb0] sm:$0xff]   ;;  %s1840_s24 = sshll.u32 %s409_s26, 4  ;;  %s3132_s24 = int_to_ptr.vmem [resolvable:$true] %s1840_s24 }
  0x5b   : > { %2160 = vmatpush3.bf16.msra.mxu0 %v2425_v5  ;;  %2180 = vmatpush3.bf16.msra.mxu1 %v2426_v6  ;;  %v576_v19 = vrot.slane %v574_v15, 1  ;;  %v581_v26 = vrot.slane %v579_v20, 1  ;;  %v691_v42 = vrot.slane %v572_v18, 1  ;;  %v692_v43 = vrot.slane %v574_v15, 2  ;;  %v2452_v47 = vld [vmem:[#allocation5 + $0x70] sm:$0xff]   ;;  %v2453_v48 = vld [vmem:[%s3175_s3 + $0xb8] sm:$0xff]  }
  0x5c   : > { %2161 = vmatprep.subr.bf16.mxu0 %v2651_v0  ;;  %2181 = vmatprep.subr.bf16.mxu1 %v2651_v0  ;;  %v2919_v27 = vsel %vm476_vm1, %v477_v22, %v478_v23  ;;  %v697_v44 = vrot.slane %v579_v20, 2  ;;  %v696_v46 = vrot.slane %v694_v40, 1  ;;  %v2454_v51 = vld [vmem:[#allocation5 + $0x78] sm:$0xff]   ;;  %v2455_v53 = vld [vmem:[#allocation5] sm:$0xff]   ;;  %v2457_v55 = vld [vmem:[#allocation5 + $0x8] sm:$0xff]   ;;  %s2575_s12 = scalar_lea.vmem %s3132_s24, 32 }
  0x5d   : > { %v577_v25 = vor.u32 %v576_v19, %v572_v18  ;;  %v693_v49 = vor.u32 %v692_v43, %v691_v42  ;;  %v2456_v54 = vld [vmem:[#allocation5 + $0x80] sm:$0xff]   ;;  %v2458_v56 = vld [vmem:[#allocation5 + $0x88] sm:$0xff]   ;;  %v2459_v57 = vld [vmem:[#allocation5 + $0x10] sm:$0xff]   ;;  %p2576_p10 = scmp.ne.s32.totalorder %s3132_s24, %s2575_s12  ;;  %s2579_s23 = sshll.u32 %s2654_s17, 4  ;;  %s2580_s23 = int_to_ptr.vmem [resolvable:$false] %s2579_s23 }
  0x5e   : > { %v698_v50 = vor.u32 %v697_v44, %v696_v46  ;;  %v2460_v58 = vld [vmem:[#allocation5 + $0x90] sm:$0xff]   ;;  %v2461_v59 = vld [vmem:[#allocation5 + $0x18] sm:$0xff]   ;;  %v2463_v61 = vld [vmem:[#allocation5 + $0x20] sm:$0xff]   ;;  %s2581_s28 = scalar_lea.vmem %s2580_s23, 64  ;;  %p2582_p4 = scmp.lt.s32.totalorder %s3132_s24, %s2580_s23 }
  0x5f   : > { %2162 = vmatpush3.bf16.msra.mxu0 %v2427_v7  ;;  %2182 = vmatpush3.bf16.msra.mxu1 %v2428_v8  ;;  %v2924_v29 = vsel %vm570_vm2, %v577_v25, %v581_v26  ;;  %v2462_v60 = vld [vmem:[#allocation5 + $0x98] sm:$0xff]   ;;  %v2464_v62 = vld [vmem:[#allocation5 + $0xa0] sm:$0xff]   ;;  %v2465_v63 = vld [vmem:[#allocation5 + $0x28] sm:$0xff]   ;;  %v1238_v26 = vrot.slane %v2887_v12, 2  ;;  %p2577_p2 = pnand %p2576_p10, %p3206_p1  ;;  %p2583_p7 = scmp.lt.s32.totalorder %s2581_s28, %s2575_s12 }
  0x60   : > { %2163 = vmatprep.subr.bf16.mxu0 %v2651_v0  ;;  %2183 = vmatprep.subr.bf16.mxu1 %v2651_v0  ;;  %v2972_v52 = vsel %vm690_vm3, %v693_v49, %v698_v50  ;;  %v2466_v1 = vld [vmem:[#allocation5 + $0xa8] sm:$0xff]   ;;  %v2467_v2 = vld [vmem:[#allocation5 + $0x30] sm:$0xff]   ;;  %v2469_v4 = vld [vmem:[#allocation5 + $0x38] sm:$0xff]  }
  0x61   : > { %v2468_v3 = vld [vmem:[#allocation5 + $0xb0] sm:$0xff]   ;;  %v2470_v5 = vld [vmem:[#allocation5 + $0xb8] sm:$0xff]   ;;  %v2471_v6 = vld [vmem:[#allocation5 + $0xc0] sm:$0xff]   ;;  %p2578_p3 = pneg %p2577_p2  ;;  %p2584_p8 = por %p2583_p7, %p2582_p4 }
  0x62   : > { %v2472_v7 = vld [vmem:[#allocation5 + $0x100] sm:$0xff]   ;;  %v2473_v8 = vld [vmem:[#allocation5 + $0xc8] sm:$0xff]   ;;  %v2478_v15 = vld [vmem:[#allocation5 + $0x118] sm:$0xff]  }
  0x63   : > { %2164 = vmatpush3.bf16.msra.mxu0 %v2429_v9  ;;  %2184 = vmatpush3.bf16.msra.mxu1 %v2430_v10  ;;  %v2474_v9 = vld [vmem:[#allocation5 + $0x108] sm:$0xff]   ;;  %v2475_v10 = vld [vmem:[#allocation5 + $0xd0] sm:$0xff]   ;;  %v2495_v22 = vld [vmem:[%s3180_s8] sm:$0xff]   ;;  %p2585_p11 = pnand %p2584_p8, %p2578_p3 }
  0x64   : > { %2165 = vmatprep.subr.bf16.mxu0 %v2651_v0  ;;  %2185 = vmatprep.subr.bf16.mxu1 %v2651_v0  ;;  %v2481_v18 = vld [vmem:[#allocation5 + $0xe8] sm:$0xff]   ;;  %v2483_v20 = vld [vmem:[#allocation5 + $0xf0] sm:$0xff]   ;;  %v2485_v23 = vld [vmem:[#allocation5 + $0xf8] sm:$0xff]  }
  0x65   : > { %v2482_v19 = vld [vmem:[#allocation5 + $0x128] sm:$0xff]   ;;  %1536 = vxpose.xlu0.c.b16.start [1/8] (narrow) %v2495_v22, 16  ;;  %v2486_v25 = vld [vmem:[#allocation5 + $0x138] sm:$0xff]   ;;  %v2501_v40 = vld [vmem:[%s3180_s8 + $0x30] sm:$0xff]  }
  0x66   : > { %v2503_v42 = vld [vmem:[%s3180_s8 + $0x38] sm:$0xff]   ;;  %v2504_v43 = vld [vmem:[%s3179_s7 + $0x8] sm:$0xff]   ;;  %v2505_v44 = vld [vmem:[%s3181_s9] sm:$0xff]  }
  0x67   : > { %2166 = vmatpush3.bf16.msra.mxu0 %v2431_v11  ;;  %2186 = vmatpush3.bf16.msra.mxu1 %v2432_v13  ;;  %v2476_v11 = vld [vmem:[#allocation5 + $0x110] sm:$0xff]   ;;  %v2477_v13 = vld [vmem:[#allocation5 + $0xd8] sm:$0xff]   ;;  %v2507_v46 = vld [vmem:[%s3181_s9 + $0x8] sm:$0xff]  }
  0x68   : > { %2167 = vmatprep.subr.bf16.mxu0 %v2651_v0  ;;  %2187 = vmatprep.subr.bf16.mxu1 %v2651_v0  ;;  %v2511_v49 = vld [vmem:[%s3181_s9 + $0x18] sm:$0xff]   ;;  %v2512_v50 = vld [vmem:[%s3179_s7 + $0x28] sm:$0xff]  }
  0x6b   : > { %2168 = vmatpush3.bf16.msra.mxu0 %v2433_v16  ;;  %2188 = vmatpush3.bf16.msra.mxu1 %v2434_v17  ;;  %v2479_v16 = vld [vmem:[#allocation5 + $0xe0] sm:$0xff]  }
  0x6c   : > { %2169 = vmatprep.subr.bf16.mxu0 %v2651_v0  ;;  %2189 = vmatprep.subr.bf16.mxu1 %v2651_v0  ;;  %v2480_v17 = vld [vmem:[#allocation5 + $0x120] sm:$0xff]  }
  0x6f   : > { %2170 = vmatpush3.bf16.msra.mxu0 %v2435_v21  ;;  %2190 = vmatpush3.bf16.msra.mxu1 %v2436_v24  ;;  %v2484_v21 = vld [vmem:[#allocation5 + $0x130] sm:$0xff]   ;;  %v2496_v24 = vld [vmem:[%s3180_s8 + $0x8] sm:$0xff]  }
  0x70   : > { %2195 = vmatprep.subr.bf16.mxu0 %v2651_v0  ;;  %2215 = vmatprep.subr.bf16.mxu1 %v2651_v0 }
  0x71   : > { %1537 = vxpose.xlu0.c.b16.cont [2/8] (narrow) %v2496_v24, 16 }
  0x72   : > { %2172 = vmatmul.mubr.bf16.vlgmr.msra.gmra.mrb[0].mxu0 %v2919_v27  ;;  %2192 = vmatmul.mubr.bf16.vlgmr.msra.gmra.mrb[0].mxu1 %v2924_v29 }
  0x73   : > { %2196 = vmatpush3.bf16.msra.mxu0 %v2439_v28  ;;  %2216 = vmatpush3.bf16.msra.mxu1 %v2440_v30  ;;  %v1239_v28 = vrot.slane %v2893_v14, 2  ;;  %v2498_v14 = vld [vmem:[%s3180_s8 + $0x18] sm:$0xff]  }
  0x74   : > { %2197 = vmatprep.subr.bf16.mxu0 %v2651_v0  ;;  %2217 = vmatprep.subr.bf16.mxu1 %v2651_v0 }
  0x75   : > { %2211 = vmatprep.mubr.msk.bf16.mxu0 %vm2652_vm0, %v2651_v0  ;;  %2231 = vmatprep.mubr.msk.bf16.mxu1 %vm2652_vm0, %v2651_v0  ;;  %v1240_v30 = vsel %vm1237_vm4, %v1238_v26, %v1239_v28 }
  0x77   : > { %2198 = vmatpush3.bf16.msra.mxu0 %v2441_v31  ;;  %2218 = vmatpush3.bf16.msra.mxu1 %v2442_v32  ;;  %v2497_v31 = vld [vmem:[%s3180_s8 + $0x10] sm:$0xff]  }
  0x78   : > { %2199 = vmatprep.subr.bf16.mxu0 %v2651_v0  ;;  %2219 = vmatprep.subr.bf16.mxu1 %v2651_v0  ;;  %v2489_v32 = vld [vmem:[#allocation2 + $0x10] sm:$0xff]  }
  0x79   : > { %1538 = vxpose.xlu0.c.b16.cont [3/8] (narrow) %v2497_v31, 16 }
  0x7b   : > { %2200 = vmatpush3.bf16.msra.mxu0 %v2443_v33  ;;  %2220 = vmatpush3.bf16.msra.mxu1 %v2444_v34  ;;  %v2490_v33 = vld [vmem:[#allocation2 + $0x18] sm:$0xff]   ;;  %v2491_v34 = vld [vmem:[#allocation2 + $0x20] sm:$0xff]  }
  0x7c   : > { %2201 = vmatprep.subr.bf16.mxu0 %v2651_v0  ;;  %2221 = vmatprep.subr.bf16.mxu1 %v2651_v0 }
  0x7d   : > { %1539 = vxpose.xlu0.c.b16.cont [4/8] (narrow) %v2498_v14, 16 }
  0x7f   : > { %2202 = vmatpush3.bf16.msra.mxu0 %v2445_v35  ;;  %2222 = vmatpush3.bf16.msra.mxu1 %v2446_v36  ;;  %v2492_v35 = vld [vmem:[#allocation2 + $0x28] sm:$0xff]   ;;  %v2499_v36 = vld [vmem:[%s3180_s8 + $0x20] sm:$0xff]  }
  0x80   : > { %2203 = vmatprep.subr.bf16.mxu0 %v2651_v0  ;;  %2223 = vmatprep.subr.bf16.mxu1 %v2651_v0 }
  0x81   : > { %1540 = vxpose.xlu0.c.b16.cont [5/8] (narrow) %v2499_v36, 16 }
  0x83   : > { %2204 = vmatpush3.bf16.msra.mxu0 %v2447_v37  ;;  %2224 = vmatpush3.bf16.msra.mxu1 %v2448_v38  ;;  %v2493_v37 = vld [vmem:[#allocation2 + $0x30] sm:$0xff]   ;;  %v2500_v38 = vld [vmem:[%s3180_s8 + $0x28] sm:$0xff]  }
  0x84   : > { %2205 = vmatprep.subr.bf16.mxu0 %v2651_v0  ;;  %2225 = vmatprep.subr.bf16.mxu1 %v2651_v0 }
  0x85   : > { %1541 = vxpose.xlu0.c.b16.cont [6/8] (narrow) %v2500_v38, 16 }
  0x87   : > { %2206 = vmatpush3.bf16.msra.mxu0 %v2449_v39  ;;  %2226 = vmatpush3.bf16.msra.mxu1 %v2450_v41  ;;  %v2494_v39 = vld [vmem:[#allocation2 + $0x38] sm:$0xff]   ;;  %v2502_v41 = vld [vmem:[%s3179_s7] sm:$0xff]  }
  0x88   : > { %2207 = vmatprep.subr.bf16.mxu0 %v2651_v0  ;;  %2227 = vmatprep.subr.bf16.mxu1 %v2651_v0 }
  0x89   : > { %1542 = vxpose.xlu0.c.b16.cont [7/8] (narrow) %v2501_v40, 16  ;;  %1640 = vxpose.xlu1.c.b16.start [1/8] (narrow) %v2502_v41, 16  ;;  %v2039_v41 = vld [vmem:[%s3178_s6] ss:$0 sm:$0xff] }
  0x8b   : > { %2208 = vmatpush3.bf16.msra.mxu0 %v2451_v45  ;;  %2228 = vmatpush3.bf16.msra.mxu1 %v2452_v47  ;;  %v2506_v45 = vld [vmem:[%s3179_s7 + $0x10] sm:$0xff]  }
  0x8c   : > { %2209 = vmatprep.subr.bf16.mxu0 %v2651_v0  ;;  %2229 = vmatprep.subr.bf16.mxu1 %v2651_v0  ;;  %v2509_v47 = vld [vmem:[%s3181_s9 + $0x10] sm:$0xff]  }
  0x8d   : > { %1543 = vxpose.xlu0.c.b16.end [8/8] (narrow) %v2503_v42, 16  ;;  %1641 = vxpose.xlu1.c.b16.cont [2/8] (narrow) %v2504_v43, 16 }
  0x8f   : > { %2210 = vmatpush3.bf16.msra.mxu0 %v2453_v48  ;;  %2230 = vmatpush3.bf16.msra.mxu1 %v2454_v51  ;;  %v2510_v48 = vld [vmem:[%s3179_s7 + $0x20] sm:$0xff]  }
  0x90   : > { %2235 = vmatprep.subr.bf16.mxu0 %v2651_v0  ;;  %2255 = vmatprep.subr.bf16.mxu1 %v2651_v0  ;;  %v2513_v51 = vld [vmem:[%s3181_s9 + $0x20] sm:$0xff]  }
  0x91   : > { %1760 = vxpose.xlu0.c.b16.start [1/8] (narrow) %v2505_v44, 16  ;;  %1642 = vxpose.xlu1.c.b16.cont [3/8] (narrow) %v2506_v45, 16 }
  0x92   : > { %2212 = vmatmul.mubr.bf16.vlgmr.msra.gmra.mrb[4].mxu0 %v2972_v52  ;;  %2232 = vmatmul.mubr.bf16.vlgmr.msra.gmra.mrb[4].mxu1 %v2924_v29  ;;  %v2487_v29 = vld [vmem:[#allocation2] sm:$0xff]  }
  0x93   : > { %2236 = vmatpush3.bf16.msra.mxu0 %v2455_v53  ;;  %2256 = vmatpush3.bf16.msra.mxu1 %v2456_v54  ;;  %v2515_v53 = vld [vmem:[%s3181_s9 + $0x28] sm:$0xff]   ;;  %v2516_v54 = vld [vmem:[%s3179_s7 + $0x38] sm:$0xff]  }
  0x94   : > { %2237 = vmatprep.subr.bf16.mxu0 %v2651_v0  ;;  %2257 = vmatprep.subr.bf16.mxu1 %v2651_v0 }
  0x95   : > { %2251 = vmatprep.mubr.msk.bf16.mxu0 %vm2652_vm0, %v2651_v0  ;;  %2271 = vmatprep.mubr.msk.bf16.mxu1 %vm2652_vm0, %v2651_v0 }
  0x96   : > { %1761 = vxpose.xlu0.c.b16.cont [2/8] (narrow) %v2507_v46, 16 }
  0x97   : > { %2238 = vmatpush3.bf16.msra.mxu0 %v2457_v55  ;;  %2258 = vmatpush3.bf16.msra.mxu1 %v2458_v56  ;;  %v2517_v55 = vld [vmem:[%s3181_s9 + $0x30] sm:$0xff]   ;;  %v2518_v56 = vld [vmem:[%s3181_s9 + $0x38] sm:$0xff]  }
  0x98   : > { %2239 = vmatprep.subr.bf16.mxu0 %v2651_v0  ;;  %2259 = vmatprep.subr.bf16.mxu1 %v2651_v0 }
  0x9a   : > { %1762 = vxpose.xlu0.c.b16.cont [3/8] (narrow) %v2509_v47, 16 }
  0x9b   : > { %2240 = vmatpush3.bf16.msra.mxu0 %v2459_v57  ;;  %2260 = vmatpush3.bf16.msra.mxu1 %v2460_v58 }
  0x9c   : > { %2241 = vmatprep.subr.bf16.mxu0 %v2651_v0  ;;  %2261 = vmatprep.subr.bf16.mxu1 %v2651_v0 }
  0x9e   : > { %1763 = vxpose.xlu0.c.b16.cont [4/8] (narrow) %v2511_v49, 16 }
  0x9f   : > { %2242 = vmatpush3.bf16.msra.mxu0 %v2461_v59  ;;  %2262 = vmatpush3.bf16.msra.mxu1 %v2462_v60 }
  0xa0   : > { %2243 = vmatprep.subr.bf16.mxu0 %v2651_v0  ;;  %2263 = vmatprep.subr.bf16.mxu1 %v2651_v0 }
  0xa2   : > { %1764 = vxpose.xlu0.c.b16.cont [5/8] (narrow) %v2513_v51, 16 }
  0xa3   : > { %2244 = vmatpush3.bf16.msra.mxu0 %v2463_v61  ;;  %2264 = vmatpush3.bf16.msra.mxu1 %v2464_v62 }
  0xa4   : > { %2245 = vmatprep.subr.bf16.mxu0 %v2651_v0  ;;  %2265 = vmatprep.subr.bf16.mxu1 %v2651_v0 }
  0xa6   : > { %1765 = vxpose.xlu0.c.b16.cont [6/8] (narrow) %v2515_v53, 16  ;;  %v2029_v53 = vld [vmem:[%s3174_s2] ss:$0 sm:$0xff] }
  0xa7   : > { %2246 = vmatpush3.bf16.msra.mxu0 %v2465_v63  ;;  %2266 = vmatpush3.bf16.msra.mxu1 %v2466_v1 }
  0xa8   : > { %2247 = vmatprep.subr.bf16.mxu0 %v2651_v0  ;;  %2267 = vmatprep.subr.bf16.mxu1 %v2651_v0 }
  0xaa   : > { %1766 = vxpose.xlu0.c.b16.cont [7/8] (narrow) %v2517_v55, 16 }
  0xab   : > { %2248 = vmatpush3.bf16.msra.mxu0 %v2467_v2  ;;  %2268 = vmatpush3.bf16.msra.mxu1 %v2468_v3 }
  0xac   : > { %2249 = vmatprep.subr.bf16.mxu0 %v2651_v0  ;;  %2269 = vmatprep.subr.bf16.mxu1 %v2651_v0 }
  0xae   : > { %1767 = vxpose.xlu0.c.b16.end [8/8] (narrow) %v2518_v56, 16 }
  0xaf   : > { %2250 = vmatpush3.bf16.msra.mxu0 %v2469_v4  ;;  %2270 = vmatpush3.bf16.msra.mxu1 %v2470_v5  ;;  %v1817_v4 = vld [vmem:[%s3182_s10] sm:$0x3]  ;;  %v2653_v5 = vmov 0  }
  0xb0   : > { %2275 = vmatprep.subr.bf16.mxu0 %v2651_v0  ;;  %2295 = vmatprep.subr.bf16.mxu1 %v2651_v0 }
  0xb2   : > { %2252 = vmatmul.mubr.bf16.vlgmr.msra.gmra.mrb[8].mxu0 %v2887_v12  ;;  %2272 = vmatmul.mubr.bf16.vlgmr.msra.gmra.mrb[8].mxu1 %v2919_v27  ;;  %v2488_v12 = vld [vmem:[#allocation2 + $0x8] sm:$0xff]  }
  0xb3   : > { %2276 = vmatpush3.bf16.msra.mxu0 %v2471_v6  ;;  %2296 = vmatpush3.bf16.msra.mxu1 %v2472_v7  ;;  %v2038_v7 = vld [vmem:[%s3176_s4] ss:$0 sm:$0xff] }
  0xb4   : > { %2277 = vmatprep.subr.bf16.mxu0 %v2651_v0  ;;  %2297 = vmatprep.subr.bf16.mxu1 %v2651_v0 }
  0xb5   : > { %2291 = vmatprep.mubr.msk.bf16.mxu0 %vm2652_vm0, %v2651_v0  ;;  %2311 = vmatprep.mubr.msk.bf16.mxu1 %vm2652_vm0, %v2651_v0 }
  0xb7   : > { %2278 = vmatpush3.bf16.msra.mxu0 %v2473_v8  ;;  %2298 = vmatpush3.bf16.msra.mxu1 %v2474_v9 }
  0xb8   : > { %2279 = vmatprep.subr.bf16.mxu0 %v2651_v0  ;;  %2299 = vmatprep.subr.bf16.mxu1 %v2651_v0 }
  0xb9   : > { %2420 = vset.pattern.permute.xlu0 %v2653_v5 }
  0xbb   : > { %2280 = vmatpush3.bf16.msra.mxu0 %v2475_v10  ;;  %2300 = vmatpush3.bf16.msra.mxu1 %v2476_v11 }
  0xbc   : > { %2281 = vmatprep.subr.bf16.mxu0 %v2651_v0  ;;  %2301 = vmatprep.subr.bf16.mxu1 %v2651_v0 }
  0xbf   : > { %2282 = vmatpush3.bf16.msra.mxu0 %v2477_v13  ;;  %2302 = vmatpush3.bf16.msra.mxu1 %v2478_v15 }
  0xc0   : > { %2283 = vmatprep.subr.bf16.mxu0 %v2651_v0  ;;  %2303 = vmatprep.subr.bf16.mxu1 %v2651_v0 }
  0xc3   : > { %2284 = vmatpush3.bf16.msra.mxu0 %v2479_v16  ;;  %2304 = vmatpush3.bf16.msra.mxu1 %v2480_v17 }
  0xc4   : > { %2285 = vmatprep.subr.bf16.mxu0 %v2651_v0  ;;  %2305 = vmatprep.subr.bf16.mxu1 %v2651_v0 }
  0xc7   : > { %2286 = vmatpush3.bf16.msra.mxu0 %v2481_v18  ;;  %2306 = vmatpush3.bf16.msra.mxu1 %v2482_v19 }
  0xc8   : > { %2287 = vmatprep.subr.bf16.mxu0 %v2651_v0  ;;  %2307 = vmatprep.subr.bf16.mxu1 %v2651_v0 }
  0xcb   : > { %2288 = vmatpush3.bf16.msra.mxu0 %v2483_v20  ;;  %2308 = vmatpush3.bf16.msra.mxu1 %v2484_v21 }
  0xcc   : > { %2289 = vmatprep.subr.bf16.mxu0 %v2651_v0  ;;  %2309 = vmatprep.subr.bf16.mxu1 %v2651_v0 }
  0xcf   : > { %2290 = vmatpush3.bf16.msra.mxu0 %v2485_v23  ;;  %2310 = vmatpush3.bf16.msra.mxu1 %v2486_v25 }
  0xd0   : > { %2315 = vmatprep.subr.bf16.mxu0 %v2651_v0  ;;  %2335 = vmatprep.subr.bf16.mxu1 %v2651_v0 }
  0xd2   : > { %2292 = vmatmul.mubr.bf16.vlgmr.msra.gmra.mrb[12].mxu0 %v2972_v52  ;;  %2312 = vmatmul.mubr.bf16.vlgmr.msra.gmra.mrb[12].mxu1 %v1240_v30  ;;  %v2514_v52 = vld [vmem:[%s3179_s7 + $0x30] sm:$0xff]  }
  0xd3   : > { %2316 = vmatpush3.bf16.msra.mxu0 %v2487_v29  ;;  %2331 = vmatprep.mubr.msk.bf16.mxu0 %vm2652_vm0, %v2651_v0 }
  0xd4   : > { %2317 = vmatprep.subr.bf16.mxu0 %v2651_v0  ;;  %2337 = vmatprep.mubr.msk.bf16.mxu1 %vm2652_vm0, %v2651_v0 }
  0xd7   : > { %2318 = vmatpush3.bf16.msra.mxu0 %v2488_v12  ;;  %v1544_v24 = vpop.trf.xlu0 }
  0xd8   : > { %2319 = vmatprep.subr.bf16.mxu0 %v2651_v0 }
  0xdb   : > { %2320 = vmatpush3.bf16.msra.mxu0 %v2489_v32 }
  0xdc   : > { %2321 = vmatprep.subr.bf16.mxu0 %v2651_v0 }
  0xdf   : > { %2322 = vmatpush3.bf16.msra.mxu0 %v2490_v33 }
  0xe0   : > { %2323 = vmatprep.subr.bf16.mxu0 %v2651_v0 }
  0xe3   : > { %2324 = vmatpush3.bf16.msra.mxu0 %v2491_v34 }
  0xe4   : > { %2325 = vmatprep.subr.bf16.mxu0 %v2651_v0 }
  0xe7   : > { %2326 = vmatpush3.bf16.msra.mxu0 %v2492_v35 }
  0xe8   : > { %2327 = vmatprep.subr.bf16.mxu0 %v2651_v0 }
  0xeb   : > { %2328 = vmatpush3.bf16.msra.mxu0 %v2493_v37 }
  0xec   : > { %2329 = vmatprep.subr.bf16.mxu0 %v2651_v0 }
  0xef   : > { %2330 = vmatpush3.bf16.msra.mxu0 %v2494_v39 }
  0xf2   : > { %2332 = vmatmul.mubr.bf16.vlgmr.msra.gmra.mrb[16].mxu0 %v2919_v27  ;;  %v2508_v27 = vld [vmem:[%s3179_s7 + $0x18] sm:$0xff]  }
  0xf3   : > { %1643 = vxpose.xlu1.c.b16.cont [4/8] (narrow) %v2508_v27, 16 }
  0xf7   : > { %1644 = vxpose.xlu1.c.b16.cont [5/8] (narrow) %v2510_v48, 16 }
  0xfb   : > { %1645 = vxpose.xlu1.c.b16.cont [6/8] (narrow) %v2512_v50, 16 }
  0xff   : > { %1646 = vxpose.xlu1.c.b16.cont [7/8] (narrow) %v2514_v52, 16 }
 0x103   : > { %1647 = vxpose.xlu1.c.b16.end [8/8] (narrow) %v2516_v54, 16 }
 0x107   : > { %2419 = vset.pattern.permute.xlu1 %v2653_v5 }
 0x108   : > { %1820 = vperm.xlu1 %2419, %v1817_v4  }
 0x145   : > { %v563_v57 = vpop.f32.mrb[0].mxu0  ;;  %v666_v58 = vpop.f32.mrb[0].mxu1 }
 0x146   : > { %v2173_v59 = vpop.f32.mrb[1].mxu0  ;;  %v667_v60 = vadd.f32 %v666_v58, %v563_v57  ;;  %v2193_v61 = vpop.f32.mrb[1].mxu1 }
 0x147   : > { %v566_v62 = vpop.f32.mrb[2].mxu0  ;;  %v669_v63 = vpop.f32.mrb[2].mxu1 }
 0x148   : > { %v2174_v1 = vpop.f32.mrb[3].mxu0  ;;  %v670_v2 = vadd.f32 %v669_v63, %v566_v62  ;;  %v2194_v3 = vpop.f32.mrb[3].mxu1 }
 0x149   : > { %v1768_v1 = vpop.trf.xlu0 }
 0x14d   : > { %v1648_v63 = vpop.trf.xlu1 }
 0x165   : > { %v783_v6 = vpop.f32.mrb[4].mxu0  ;;  %v907_v10 = vpop.f32.mrb[4].mxu1 }
 0x166   : > { %v790_v8 = vadd.f32 %v783_v6, %v667_v60  ;;  %v2213_v9 = vpop.f32.mrb[5].mxu0  ;;  %v2233_v13 = vpop.f32.mrb[5].mxu1 }
 0x167   : > { %v786_v11 = vpop.f32.mrb[6].mxu0  ;;  %v910_v18 = vpop.f32.mrb[6].mxu1 }
 0x168   : > { %v1439_v15 = vadd.f32 %v2038_v7, %v790_v8  ;;  %v791_v16 = vadd.f32 %v786_v11, %v670_v2  ;;  %v2214_v17 = vpop.f32.mrb[7].mxu0  ;;  %v2234_v19 = vpop.f32.mrb[7].mxu1 }
 0x16a   : > { %v1440_v20 = vadd.f32 %v2038_v7, %v791_v16  ;;  %v1441_v21 = vmax.f32 %v1439_v15, 0.0 }
 0x16c   : > { %v1442_v22 = vmax.f32 %v1440_v20, 0.0 }
 0x16e   : > { %v1443_v23 = vpack.c.bf16 %v1442_v22, %v1441_v21 }
 0x170   : > { %2336 = vmatpush3.bf16.xpose.msra.mxu1 %v1443_v23 }
 0x171   : > { %2341 = vmatprep.subr.bf16.mxu1 %v2651_v0 }
 0x177   : > { %2338 = vmatmul.mubr.bf16.vlgmr.msra.gmra.mrb[16].mxu1 %v1544_v24 }
 0x178   : > { %2343 = vmatprep.mubr.msk.bf16.mxu1 %vm2652_vm0, %v2651_v0 }
 0x185   : > { %v997_v25 = vpop.f32.mrb[8].mxu0  ;;  %v1103_v29 = vpop.f32.mrb[8].mxu1 }
 0x186   : > { %v998_v26 = vadd.f32 %v997_v25, %v907_v10  ;;  %v2253_v28 = vpop.f32.mrb[9].mxu0  ;;  %v2273_v31 = vpop.f32.mrb[9].mxu1 }
 0x187   : > { %v1000_v30 = vpop.f32.mrb[10].mxu0  ;;  %v1106_v33 = vpop.f32.mrb[10].mxu1 }
 0x188   : > { %v1001_v12 = vadd.f32 %v1000_v30, %v910_v18  ;;  %v1110_v14 = vadd.f32 %v1103_v29, %v998_v26  ;;  %v2254_v32 = vpop.f32.mrb[11].mxu0  ;;  %v2274_v34 = vpop.f32.mrb[11].mxu1 }
 0x189   : > { %v1821_v13 = vpop.permute.xlu1 %1820 }
 0x18a   : > { %v1111_v35 = vadd.f32 %v1106_v33, %v1001_v12 }
 0x1a5   : > { %v1211_v36 = vpop.f32.mrb[12].mxu0  ;;  %v1324_v39 = vpop.f32.mrb[12].mxu1 }
 0x1a6   : > { %v1218_v37 = vadd.f32 %v1211_v36, %v1110_v14  ;;  %v2293_v38 = vpop.f32.mrb[13].mxu0  ;;  %v2313_v42 = vpop.f32.mrb[13].mxu1 }
 0x1a7   : > { %v1214_v40 = vpop.f32.mrb[14].mxu0  ;;  %v1327_v46 = vpop.f32.mrb[14].mxu1 }
 0x1a8   : > { %v1219_v43 = vadd.f32 %v1214_v40, %v1111_v35  ;;  %v1331_v44 = vadd.f32 %v1324_v39, %v1218_v37  ;;  %v2294_v45 = vpop.f32.mrb[15].mxu0  ;;  %v2314_v27 = vpop.f32.mrb[15].mxu1 }
 0x1aa   : > { %v1451_v47 = vadd.f32 %v2039_v41, %v1331_v44  ;;  %v1332_v48 = vadd.f32 %v1327_v46, %v1219_v43 }
 0x1ac   : > { %v1452_v49 = vadd.f32 %v2039_v41, %v1332_v48  ;;  %v1453_v50 = vmax.f32 %v1451_v47, 0.0 }
 0x1ae   : > { %v1454_v51 = vmax.f32 %v1452_v49, 0.0 }
 0x1b0   : > { %v1455_v52 = vpack.c.bf16 %v1454_v51, %v1453_v50 }
 0x1c5   : > { %v1422_v54 = vpop.f32.mrb[16].mxu0 }
 0x1c6   : > { %v1423_v55 = vadd.f32 %v2029_v53, %v1422_v54  ;;  %v2333_v56 = vpop.f32.mrb[17].mxu0 }
 0x1c7   : > { %v1425_v57 = vpop.f32.mrb[18].mxu0 }
 0x1c8   : > { %v1426_v58 = vadd.f32 %v2029_v53, %v1425_v57  ;;  %v2334_v59 = vpop.f32.mrb[19].mxu0  ;;  %v1429_v60 = vmax.f32 %v1423_v55, 0.0 }
 0x1ca   : > { %v1430_v61 = vmax.f32 %v1426_v58, 0.0 }
 0x1cc   : > { %v1431_v62 = vpack.c.bf16 %v1430_v61, %v1429_v60 }
 0x1ce   : > { %2342 = vmatpush3.bf16.xpose.msra.mxu1 %v1431_v62 }
 0x1cf   : > { %2347 = vmatprep.subr.bf16.mxu1 %v2651_v0 }
 0x1d5   : > { %2344 = vmatmul.mubr.bf16.vlgmr.msra.gmra.mrb[20].mxu1 %v1648_v63 }
 0x1d6   : > { %2348 = vmatpush3.bf16.xpose.msra.mxu1 %v1455_v52  ;;  %2349 = vmatprep.mubr.msk.bf16.mxu1 %vm2652_vm0, %v2651_v0 }
 0x1dd   : > { %2350 = vmatmul.mubr.bf16.vlgmr.msra.gmra.mrb[24].mxu1 %v1768_v1 }
 0x24a   : > { %v1586_v2 = vpop.f32.mrb[16].mxu1 }
 0x24b   : > { %v2339_v3 = vpop.f32.mrb[17].mxu1 }
 0x24c   : > { %v1589_v4 = vpop.f32.mrb[18].mxu1 }
 0x24d   : > { %v2340_v5 = vpop.f32.mrb[19].mxu1 }
 0x2a8   : > { %v1690_v6 = vpop.f32.mrb[20].mxu1 }
 0x2a9   : > { %v1691_v7 = vadd.f32 %v1690_v6, %v1586_v2  ;;  %v2345_v8 = vpop.f32.mrb[21].mxu1 }
 0x2aa   : > { %v1693_v9 = vpop.f32.mrb[22].mxu1 }
 0x2ab   : > { %v2346_v10 = vpop.f32.mrb[23].mxu1 }
 0x2b0   : > { %v1810_v11 = vpop.f32.mrb[24].mxu1 }
 0x2b1   : > { %v1816_v0 = vadd.f32 %v1810_v11, %v1691_v7  ;;  %v2351_v15 = vpop.f32.mrb[25].mxu1 }
 0x2b2   : > { %v1813_v16 = vpop.f32.mrb[26].mxu1 }
 0x2b3   : > { %v1823_v17 = vadd.f32 %v1821_v13, %v1816_v0  ;;  %v2352_v18 = vpop.f32.mrb[27].mxu1 }
 0x2b5   : > { %1825 = vst.msk [vmem:[%s409_s26] sm:$0x3] %vm1824_vm5, %v1823_v17 }
 0x2b6   : > { %2588 = shalt.err (!%p2585_p11)
}
 0x2b7   : > { %s2589_s29 = scalar_lea.hbm %s3130_s14, 32  ;;  %s2593_s16 = scalar_lea.hbm %s3183_s11, 64 }
 0x2b8   : > { %p2590_p13 = scmp.ne.s32.totalorder %s3130_s14, %s2589_s29  ;;  %p2594_p6 = scmp.lt.u32.totalorder %s3130_s14, %s3183_s11 }
 0x2b9   : > { %p2595_p9 = scmp.lt.u32.totalorder %s2593_s16, %s2589_s29  ;;  %p2597_p10 = scmp.lt.u32.totalorder %s2589_s29, %s3130_s14 }
 0x2ba   : > { %p2591_p5 = pnand %p2590_p13, %p3206_p1 }
 0x2bb   : > { %p2596_p12 = por %p2595_p9, %p2594_p6 }
 0x2bc   : > { %p2592_p0 = pneg %p2591_p5 }
 0x2bd   : > { %p2598_p2 = por %p2597_p10, %p2596_p12 }
 0x2bf   : > { %p2599_p3 = pnand %p2598_p2, %p2592_p0 }
 0x2c1   : > { %2602 = shalt.err (!%p2599_p3)
}
 0x2c2   : > { %2362 = dma.vmem_to_hbm [thread:$0]  (%p3206_p1), %s3132_s24, 32, %s3130_s14, %s1827_s21  }
 0x2c3 PF: > { %s3207_s26 = sld [smem:[#allocation11_spill]]  ;;  %s3208_s25 = sld [smem:[#allocation15_spill]] }
 0x2c4   : > { %p2379_p4 = scmp.ge.s32.totalorder %s2645_s20, 2 }
 0x2c9   : > { %s1852_s30 = sand.u32 1, %s3207_s26   ;;  %p3209_p7 = scmp.ne.s32.totalorder %s3208_s25, 0 }
 0x2ca   : > { %s1853_s12 = scalar_lea.sflag [#allocation4], %s1852_s30 }
 0x2cb   : > { %p2372_p8 = pnand %p2379_p4, %p3209_p7 }
 0x2cd   : > { %2628 = dma.done.wait (!%p2372_p8), %s1853_s12, 32  }
 0x2ce   : > { %2630 = vsyncadd (!%p2372_p8), %s1853_s12, 4294967264  ;;  %s3210_s20 = sld [smem:[#allocation13_spill]]  ;;  %s3211_s23 = sld [smem:[#allocation12_spill]] }
 0x2cf   : > { %s3212_s19 = sld [smem:[#allocation14_spill]]  ;;  %s3213_s17 = smov %s2637_s18 }
 0x2d4   : > { %p23_p11 = scmp.ge.s32.totalorder %s3210_s20, 4   ;;  %s3214_s18 = smov %s3211_s23 }
 0x2d6   :  { %25 = sbr.rel (!%p23_p11) target bundleno = 5 (0x5), region = 114 }
 0x2dd   :  { %1858 = vsyncpa [#allocation3], 1 }
 0x2de   :  { %1860 = vsyncpa [#allocation3 + $0x1], 1 }
 0x2df   :  { %1861 = vsyncpa [#allocation6], 1 }
 0x2e0   :  { %1862 = vsyncpa [#allocation4], 1 }
 0x2e1   :  { %1864 = vsyncpa [#allocation4 + $0x1], 1 }

</bundles_post_ra>
